<compile_context>
chip_gen: v5e
topology: v5e:2x2
jax: 0.10.0
libtpu: 0.0.40
codegen_flags: <defaults>
</compile_context>

<pallas_src>
import functools
import math

import jax
import jax.numpy as jnp
from jax import lax
from jax.experimental import pallas as pl
from jax.experimental.pallas import tpu as pltpu


_BN_EPS = 1e-5


# --------------------------------------------------------------------------
# Small helpers
# --------------------------------------------------------------------------
def _cdiv(a, b):
    return (a + b - 1) // b


def _round_up(x, m):
    return _cdiv(x, m) * m


def _tpu_generation():
    try:
        kind = jax.devices()[0].device_kind.lower()
    except Exception:
        return "unknown"
    for g in ("v7", "v6", "v5"):
        if g in kind:
            return g
    return "unknown"


def _hw_config():
    """Generation-aware VMEM limits / fused-path budget / activation dtype."""
    gen = _tpu_generation()
    if gen == "v7":   # 64 MiB VMEM, native bf16 VPU
        return {"vmem_limit": 56 << 20, "fuse_budget": 40 << 20,
                "act_dtype": jnp.bfloat16}
    if gen == "v6":   # 128 MiB VMEM, native bf16 VPU
        return {"vmem_limit": 100 << 20, "fuse_budget": 80 << 20,
                "act_dtype": jnp.bfloat16}
    if gen == "v5":   # 128 MiB VMEM, no bf16 VPU -> keep f32 activations
        return {"vmem_limit": 100 << 20, "fuse_budget": 80 << 20,
                "act_dtype": jnp.float32}
    # unknown generation: be conservative
    return {"vmem_limit": 32 << 20, "fuse_budget": 16 << 20,
            "act_dtype": jnp.float32}


def _pick_batch_tile(batch, cap=8192):
    """Padding-aware lane-aligned batch tile for the streaming fallback."""
    nb = _cdiv(batch, cap)
    return _round_up(_cdiv(batch, nb), 128)


def _const_spec(shape):
    # whole array, fetched once, VMEM-resident across all grid steps
    return pl.BlockSpec(shape, lambda i: (0,) * len(shape))


def _col_tiled_spec(rows, tile_b):
    # feature-major [rows, batch] tiled along the batch (lane) axis
    return pl.BlockSpec((rows, tile_b), lambda i: (0, i))


def _stat_spec(rows):
    # per-tile partial-sum output [nb, rows, 1]; leading dim squeezed in-kernel
    return pl.BlockSpec((None, rows, 1), lambda i: (i, 0, 0))


# --------------------------------------------------------------------------
# Fused single-kernel path (whole padded batch VMEM-resident)
# --------------------------------------------------------------------------
def _fused_kernel(x_ref, w1_ref, b1_ref, g1_ref, be1_ref,
                  w2_ref, b2_ref, g2_ref, be2_ref,
                  w3_ref, b3_ref, out_ref, *, true_batch):
    x = x_ref[...]                      # [K, bp] f32
    bp = x.shape[1]
    inv_n = jnp.float32(1.0 / true_batch)
    need_mask = bp != true_batch        # static
    if need_mask:
        mask = lax.broadcasted_iota(jnp.int32, (1, bp), 1) < true_batch

    # fc1 + relu (single merged MXU matmul over numeric+embedded features)
    h1 = jnp.maximum(
        jnp.dot(w1_ref[...], x, preferred_element_type=jnp.float32)
        + b1_ref[...], 0.0)
    if need_mask:
        h1 = jnp.where(mask, h1, 0.0)

    # bn1: batch stats (lane reduction) + in-kernel fold, variance clamped
    m1 = jnp.sum(h1, axis=1, keepdims=True) * inv_n
    v1 = jnp.maximum(jnp.sum(h1 * h1, axis=1, keepdims=True) * inv_n - m1 * m1,
                     0.0)
    a1 = g1_ref[...] * lax.rsqrt(v1 + _BN_EPS)
    c1 = be1_ref[...] - m1 * a1

    # fc2 + relu
    h2 = jnp.maximum(
        jnp.dot(w2_ref[...], h1 * a1 + c1, preferred_element_type=jnp.float32)
        + b2_ref[...], 0.0)
    if need_mask:
        h2 = jnp.where(mask, h2, 0.0)

    # bn2
    m2 = jnp.sum(h2, axis=1, keepdims=True) * inv_n
    v2 = jnp.maximum(jnp.sum(h2 * h2, axis=1, keepdims=True) * inv_n - m2 * m2,
                     0.0)
    a2 = g2_ref[...] * lax.rsqrt(v2 + _BN_EPS)
    c2 = be2_ref[...] - m2 * a2

    # fc3 + sigmoid (exp on the EUP)
    z = jnp.dot(w3_ref[...], h2 * a2 + c2, preferred_element_type=jnp.float32) \
        + b3_ref[...]
    out_ref[...] = jax.nn.sigmoid(z).astype(out_ref.dtype)


def _fused_forward(x_fm, params, *, true_batch, vmem_limit):
    _, bp = x_fm.shape
    out_dim = params["w3"].shape[0]
    plist = [params[k] for k in ("w1", "b1", "g1", "be1",
                                 "w2", "b2", "g2", "be2", "w3", "b3")]
    kern = functools.partial(_fused_kernel, true_batch=true_batch)
    return pl.pallas_call(
        kern,
        grid=(1,),
        in_specs=[_const_spec(x_fm.shape)] + [_const_spec(p.shape) for p in plist],
        out_specs=_const_spec((out_dim, bp)),
        out_shape=jax.ShapeDtypeStruct((out_dim, bp), jnp.float32),
        compiler_params=pltpu.CompilerParams(
            dimension_semantics=("arbitrary",),
            vmem_limit_bytes=vmem_limit),
    )(x_fm, *plist)


# --------------------------------------------------------------------------
# Streaming fallback (very large batch): 3 pallas_calls, all-parallel grids
# --------------------------------------------------------------------------
def _fc_relu_stats_kernel(x_ref, w_ref, b_ref, h_ref, s_ref, ss_ref,
                          *, true_batch, tile_b, padded):
    i = pl.program_id(0)
    h = jnp.maximum(
        jnp.dot(w_ref[...], x_ref[...], preferred_element_type=jnp.float32)
        + b_ref[...], 0.0)
    if padded:   # mask padded batch columns out of the statistics
        col = i * tile_b + lax.broadcasted_iota(jnp.int32, (1, tile_b), 1)
        h = jnp.where(col < true_batch, h, 0.0)
    h_ref[...] = h.astype(h_ref.dtype)
    # per-tile partial sums -> keeps the grid axis fully "parallel" (megacore)
    s_ref[...] = jnp.sum(h, axis=1, keepdims=True)
    ss_ref[...] = jnp.sum(h * h, axis=1, keepdims=True)


def _bn_fc_relu_stats_kernel(h_ref, a_ref, c_ref, w_ref, b_ref,
                             o_ref, s_ref, ss_ref,
                             *, true_batch, tile_b, padded):
    i = pl.program_id(0)
    x = h_ref[...].astype(jnp.float32) * a_ref[...] + c_ref[...]   # folded BN
    h = jnp.maximum(
        jnp.dot(w_ref[...], x, preferred_element_type=jnp.float32)
        + b_ref[...], 0.0)
    if padded:
        col = i * tile_b + lax.broadcasted_iota(jnp.int32, (1, tile_b), 1)
        h = jnp.where(col < true_batch, h, 0.0)
    o_ref[...] = h.astype(o_ref.dtype)
    s_ref[...] = jnp.sum(h, axis=1, keepdims=True)
    ss_ref[...] = jnp.sum(h * h, axis=1, keepdims=True)


def _bn_fc_sigmoid_kernel(h_ref, a_ref, c_ref, w_ref, b_ref, o_ref):
    x = h_ref[...].astype(jnp.float32) * a_ref[...] + c_ref[...]   # folded BN
    z = jnp.dot(w_ref[...], x, preferred_element_type=jnp.float32) + b_ref[...]
    o_ref[...] = jax.nn.sigmoid(z).astype(o_ref.dtype)


def _fc1_layer(x_fm, w, b, *, true_batch, tile_b, act_dtype, vmem_limit):
    k_in, bp = x_fm.shape
    h_dim = w.shape[0]
    nb = bp // tile_b
    kern = functools.partial(_fc_relu_stats_kernel, true_batch=true_batch,
                             tile_b=tile_b, padded=(bp != true_batch))
    return pl.pallas_call(
        kern,
        grid=(nb,),
        in_specs=[_col_tiled_spec(k_in, tile_b),
                  _const_spec(w.shape), _const_spec(b.shape)],
        out_specs=[_col_tiled_spec(h_dim, tile_b),
                   _stat_spec(h_dim), _stat_spec(h_dim)],
        out_shape=[jax.ShapeDtypeStruct((h_dim, bp), act_dtype),
                   jax.ShapeDtypeStruct((nb, h_dim, 1), jnp.float32),
                   jax.ShapeDtypeStruct((nb, h_dim, 1), jnp.float32)],
        compiler_params=pltpu.CompilerParams(
            dimension_semantics=("parallel",),
            vmem_limit_bytes=vmem_limit),
    )(x_fm, w, b)


def _bn_fc_relu_layer(h, a, c, w, b, *, true_batch, tile_b, act_dtype,
                      vmem_limit):
    h_in, bp = h.shape
    h_out = w.shape[0]
    nb = bp // tile_b
    kern = functools.partial(_bn_fc_relu_stats_kernel, true_batch=true_batch,
                             tile_b=tile_b, padded=(bp != true_batch))
    return pl.pallas_call(
        kern,
        grid=(nb,),
        in_specs=[_col_tiled_spec(h_in, tile_b),
                  _const_spec(a.shape), _const_spec(c.shape),
                  _const_spec(w.shape), _const_spec(b.shape)],
        out_specs=[_col_tiled_spec(h_out, tile_b),
                   _stat_spec(h_out), _stat_spec(h_out)],
        out_shape=[jax.ShapeDtypeStruct((h_out, bp), act_dtype),
                   jax.ShapeDtypeStruct((nb, h_out, 1), jnp.float32),
                   jax.ShapeDtypeStruct((nb, h_out, 1), jnp.float32)],
        compiler_params=pltpu.CompilerParams(
            dimension_semantics=("parallel",),
            vmem_limit_bytes=vmem_limit),
    )(h, a, c, w, b)


def _bn_fc_sigmoid_layer(h, a, c, w, b, *, tile_b, vmem_limit):
    h_in, bp = h.shape
    out_dim = w.shape[0]
    nb = bp // tile_b
    return pl.pallas_call(
        _bn_fc_sigmoid_kernel,
        grid=(nb,),
        in_specs=[_col_tiled_spec(h_in, tile_b),
                  _const_spec(a.shape), _const_spec(c.shape),
                  _const_spec(w.shape), _const_spec(b.shape)],
        out_specs=_col_tiled_spec(out_dim, tile_b),
        out_shape=jax.ShapeDtypeStruct((out_dim, bp), jnp.float32),
        compiler_params=pltpu.CompilerParams(
            dimension_semantics=("parallel",),
            vmem_limit_bytes=vmem_limit),
    )(h, a, c, w, b)


def _fold_bn(s_parts, ss_parts, gamma, beta, batch):
    # tiny [H,1] glue: sum per-tile partials, biased variance (clamped), fold
    mean = jnp.sum(s_parts, axis=0) / batch
    var = jnp.maximum(jnp.sum(ss_parts, axis=0) / batch - mean * mean, 0.0)
    a = gamma * lax.rsqrt(var + _BN_EPS)
    c = beta - mean * a
    return a, c


# --------------------------------------------------------------------------
# Full nn2 forward
# --------------------------------------------------------------------------
def _build_feature_major(x_num, x_cat, params):
    # embedding gather from the transposed [2, vocab] table -> already
    # feature-major, so no extra XLA transpose of the embedded features
    emb_fm = [jnp.take(tbl.T, x_cat[:, i], axis=1)
              for i, tbl in enumerate(params["embeds"])]
    return jnp.concatenate(
        [x_num.astype(jnp.float32).T] + [e.astype(jnp.float32) for e in emb_fm],
        axis=0)                                            # [K, B]


def nn2_forward(x_num, x_cat, params, *, act_dtype=None, force_streaming=False):
    """x_num: [B, num_numeric] float, x_cat: [B, n_cat] int32 -> [B, output]."""
    cfg = _hw_config()
    if act_dtype is None:
        act_dtype = cfg["act_dtype"]
    batch = x_num.shape[0]

    x_fm = _build_feature_major(x_num, x_cat, params)      # [K, B] f32
    k_in = x_fm.shape[0]
    h1_dim = params["w1"].shape[0]
    h2_dim = params["w2"].shape[0]

    # ---- fused path: whole padded batch resident in VMEM ----
    bp_f = _round_up(batch, 128)
    # conservative VMEM bytes/column (double-buffered input + f32 intermediates)
    per_col = 4 * (2 * k_in + 3 * h1_dim + 3 * h2_dim + 16)
    if (not force_streaming) and per_col * bp_f <= cfg["fuse_budget"]:
        xp = x_fm if bp_f == batch else jnp.pad(x_fm, ((0, 0), (0, bp_f - batch)))
        out_fm = _fused_forward(xp, params, true_batch=batch,
                                vmem_limit=cfg["vmem_limit"])
        return out_fm[:, :batch].T

    # ---- streaming fallback: h1/h2 round-trip HBM (bf16 on v6e/v7x) ----
    tile_b = _pick_batch_tile(batch)
    nb = _cdiv(batch, tile_b)
    bp = tile_b * nb
    xp = x_fm if bp == batch else jnp.pad(x_fm, ((0, 0), (0, bp - batch)))

    h1, s1, ss1 = _fc1_layer(xp, params["w1"], params["b1"], true_batch=batch,
                             tile_b=tile_b, act_dtype=act_dtype,
                             vmem_limit=cfg["vmem_limit"])
    a1, c1 = _fold_bn(s1, ss1, params["g1"], params["be1"], batch)

    h2, s2, ss2 = _bn_fc_relu_layer(h1, a1, c1, params["w2"], params["b2"],
                                    true_batch=batch, tile_b=tile_b,
                                    act_dtype=act_dtype,
                                    vmem_limit=cfg["vmem_limit"])
    a2, c2 = _fold_bn(s2, ss2, params["g2"], params["be2"], batch)

    out_fm = _bn_fc_sigmoid_layer(h2, a2, c2, params["w3"], params["b3"],
                                  tile_b=tile_b, vmem_limit=cfg["vmem_limit"])
    return out_fm[:, :batch].T          # back to PyTorch's [batch, output_size]


# --------------------------------------------------------------------------
# Parameters + pure-JAX reference
# --------------------------------------------------------------------------
def init_params(key, num_numeric, n_unique, hidden1, hidden2, output_size):
    embed_dim = 2
    input_size = num_numeric + embed_dim * len(n_unique)
    keys = jax.random.split(key, 3 + len(n_unique))

    def lin(k, fan_in, fan_out):
        bound = 1.0 / math.sqrt(fan_in)
        kw, kb = jax.random.split(k)
        w = jax.random.uniform(kw, (fan_out, fan_in), jnp.float32, -bound, bound)
        b = jax.random.uniform(kb, (fan_out, 1), jnp.float32, -bound, bound)
        return w, b

    w1, b1 = lin(keys[0], input_size, hidden1)
    w2, b2 = lin(keys[1], hidden1, hidden2)
    w3, b3 = lin(keys[2], hidden2, output_size)

    params = {
        "w1": w1, "b1": b1,
        "g1": jnp.ones((hidden1, 1), jnp.float32),
        "be1": jnp.zeros((hidden1, 1), jnp.float32),
        "w2": w2, "b2": b2,
        "g2": jnp.ones((hidden2, 1), jnp.float32),
        "be2": jnp.zeros((hidden2, 1), jnp.float32),
        "w3": w3, "b3": b3,
        "embeds": [jax.random.normal(keys[3 + i], (n, 2), jnp.float32)
                   for i, n in enumerate(n_unique)],
    }
    return params, input_size


def nn2_reference(x_num, x_cat, params):
    embedded = [jnp.take(tbl, x_cat[:, i], axis=0)
                for i, tbl in enumerate(params["embeds"])]
    x = jnp.concatenate([x_num.astype(jnp.float32)] + embedded, axis=1)

    def bn(h, g, b):
        m = jnp.mean(h, axis=0, keepdims=True)
        v = jnp.mean(jnp.square(h - m), axis=0, keepdims=True)
        return (h - m) * lax.rsqrt(v + _BN_EPS) * g.T + b.T

    h = jnp.maximum(x @ params["w1"].T + params["b1"].T, 0.0)
    h = bn(h, params["g1"], params["be1"])
    h = jnp.maximum(h @ params["w2"].T + params["b2"].T, 0.0)
    h = bn(h, params["g2"], params["be2"])
    z = h @ params["w3"].T + params["b3"].T
    return jax.nn.sigmoid(z)


if __name__ == "__main__":
    key = jax.random.PRNGKey(0)
    k_param, k_num, k_cat = jax.random.split(key, 3)

    # small shapes consistent with the module; batch not a multiple of the
    # lane tile so the padding/masking path is exercised too.
    batch = 300
    num_numeric = 6
    n_unique = [5, 7]
    hidden1, hidden2 = 32, 16
    output_size = 1

    params, input_size = init_params(k_param, num_numeric, n_unique,
                                     hidden1, hidden2, output_size)

    x_num = jax.random.normal(k_num, (batch, num_numeric), jnp.float32)
    cat_keys = jax.random.split(k_cat, len(n_unique))
    x_cat = jnp.stack(
        [jax.random.randint(cat_keys[i], (batch,), 0, n)
         for i, n in enumerate(n_unique)], axis=1).astype(jnp.int32)

    ref = jax.block_until_ready(nn2_reference(x_num, x_cat, params))

    # primary (fused single-kernel) path
    out = jax.block_until_ready(nn2_forward(x_num, x_cat, params))
    assert out.shape == (batch, output_size)
    assert bool(jnp.all((out >= 0.0) & (out <= 1.0)))
    err_fused = float(jnp.max(jnp.abs(out - ref)))
    assert err_fused < 5e-3, f"fused path mismatch vs reference: {err_fused}"

    # streaming fallback path (large-batch structure; bf16 streams on v6e/v7x)
    out_s = jax.block_until_ready(
        nn2_forward(x_num, x_cat, params, force_streaming=True))
    assert out_s.shape == (batch, output_size)
    err_stream = float(jnp.max(jnp.abs(out_s - ref)))
    assert err_stream < 2e-2, f"streaming path mismatch vs reference: {err_stream}"

    print("KERNEL_OK")
</pallas_src>

<mosaic_0001>
module attributes {stable_mosaic.version = 11 : i64} {
  func.func @_fused_kernel(%arg0: i32, %arg1: memref<10x384xf32, #tpu.memory_space<vmem>>, %arg2: memref<32x10xf32, #tpu.memory_space<vmem>>, %arg3: memref<32x1xf32, #tpu.memory_space<vmem>>, %arg4: memref<32x1xf32, #tpu.memory_space<vmem>>, %arg5: memref<32x1xf32, #tpu.memory_space<vmem>>, %arg6: memref<16x32xf32, #tpu.memory_space<vmem>>, %arg7: memref<16x1xf32, #tpu.memory_space<vmem>>, %arg8: memref<16x1xf32, #tpu.memory_space<vmem>>, %arg9: memref<16x1xf32, #tpu.memory_space<vmem>>, %arg10: memref<1x16xf32, #tpu.memory_space<vmem>>, %arg11: memref<1x1xf32, #tpu.memory_space<vmem>>, %arg12: memref<1x384xf32, #tpu.memory_space<vmem>>) attributes {dimension_semantics = [#tpu.dimension_semantics<arbitrary>], iteration_bounds = array<i64: 1>, scalar_prefetch = 0 : i64, scratch_operands = 0 : i64, tpu.core_type = #tpu.core_type<tc>, window_params = [{pipeline_mode = #tpu.pipeline_mode<synchronous>, transform_indices = @transform_0, window_bounds = array<i64: 10, 384>}, {pipeline_mode = #tpu.pipeline_mode<synchronous>, transform_indices = @transform_1, window_bounds = array<i64: 32, 10>}, {pipeline_mode = #tpu.pipeline_mode<synchronous>, transform_indices = @transform_2, window_bounds = array<i64: 32, 1>}, {pipeline_mode = #tpu.pipeline_mode<synchronous>, transform_indices = @transform_3, window_bounds = array<i64: 32, 1>}, {pipeline_mode = #tpu.pipeline_mode<synchronous>, transform_indices = @transform_4, window_bounds = array<i64: 32, 1>}, {pipeline_mode = #tpu.pipeline_mode<synchronous>, transform_indices = @transform_5, window_bounds = array<i64: 16, 32>}, {pipeline_mode = #tpu.pipeline_mode<synchronous>, transform_indices = @transform_6, window_bounds = array<i64: 16, 1>}, {pipeline_mode = #tpu.pipeline_mode<synchronous>, transform_indices = @transform_7, window_bounds = array<i64: 16, 1>}, {pipeline_mode = #tpu.pipeline_mode<synchronous>, transform_indices = @transform_8, window_bounds = array<i64: 16, 1>}, {pipeline_mode = #tpu.pipeline_mode<synchronous>, transform_indices = @transform_9, window_bounds = array<i64: 1, 16>}, {pipeline_mode = #tpu.pipeline_mode<synchronous>, transform_indices = @transform_10, window_bounds = array<i64: 1, 1>}, {pipeline_mode = #tpu.pipeline_mode<synchronous>, transform_indices = @transform_11, window_bounds = array<i64: 1, 384>}]} {
    %c0 = arith.constant 0 : index
    %c0_0 = arith.constant 0 : index
    %0 = vector.load %arg1[%c0, %c0_0] : memref<10x384xf32, #tpu.memory_space<vmem>>, vector<10x384xf32>
    %1 = tpu.iota {dimensions = array<i32: 1>} : vector<1x384xi32>
    %c300_i32 = arith.constant 300 : i32
    %2 = vector.broadcast %c300_i32 : i32 to vector<1x384xi32>
    %3 = arith.cmpi slt, %1, %2 : vector<1x384xi32>
    %c0_1 = arith.constant 0 : index
    %c0_2 = arith.constant 0 : index
    %4 = vector.load %arg2[%c0_1, %c0_2] : memref<32x10xf32, #tpu.memory_space<vmem>>, vector<32x10xf32>
    %cst = arith.constant dense<0.000000e+00> : vector<32x384xf32>
    %5 = tpu.matmul %4, %0, %cst {dimension_numbers = #tpu.dot_dimension_numbers<[1], [0], [0], [1], [0, 0, 1, 1], [], []>} : vector<32x10xf32>, vector<10x384xf32>, vector<32x384xf32> -> vector<32x384xf32>
    %c0_3 = arith.constant 0 : index
    %c0_4 = arith.constant 0 : index
    %6 = vector.load %arg3[%c0_3, %c0_4] : memref<32x1xf32, #tpu.memory_space<vmem>>, vector<32x1xf32>
    %7 = vector.broadcast %6 : vector<32x1xf32> to vector<32x384xf32>
    %8 = arith.addf %5, %7 : vector<32x384xf32>
    %cst_5 = arith.constant 0.000000e+00 : f32
    %9 = vector.broadcast %cst_5 : f32 to vector<32x384xf32>
    %10 = arith.maximumf %8, %9 : vector<32x384xf32>
    %cst_6 = arith.constant 0.000000e+00 : f32
    %11 = vector.shape_cast %3 : vector<1x384xi1> to vector<1x384xi1>
    %12 = vector.broadcast %11 : vector<1x384xi1> to vector<32x384xi1>
    %13 = vector.broadcast %cst_6 : f32 to vector<32x384xf32>
    %14 = arith.select %12, %10, %13 : vector<32x384xi1>, vector<32x384xf32>
    %cst_7 = arith.constant dense<0.000000e+00> : vector<32xf32>
    %15 = vector.multi_reduction <add>, %14, %cst_7 [1] : vector<32x384xf32> to vector<32xf32>
    %16 = vector.shape_cast %15 : vector<32xf32> to vector<32x1xf32>
    %cst_8 = arith.constant 0.00333333341 : f32
    %17 = vector.broadcast %cst_8 : f32 to vector<32x1xf32>
    %18 = arith.mulf %16, %17 : vector<32x1xf32>
    %19 = arith.mulf %14, %14 : vector<32x384xf32>
    %cst_9 = arith.constant dense<0.000000e+00> : vector<32xf32>
    %20 = vector.multi_reduction <add>, %19, %cst_9 [1] : vector<32x384xf32> to vector<32xf32>
    %21 = vector.shape_cast %20 : vector<32xf32> to vector<32x1xf32>
    %cst_10 = arith.constant 0.00333333341 : f32
    %22 = vector.broadcast %cst_10 : f32 to vector<32x1xf32>
    %23 = arith.mulf %21, %22 : vector<32x1xf32>
    %24 = arith.mulf %18, %18 : vector<32x1xf32>
    %25 = arith.subf %23, %24 : vector<32x1xf32>
    %cst_11 = arith.constant 0.000000e+00 : f32
    %26 = vector.broadcast %cst_11 : f32 to vector<32x1xf32>
    %27 = arith.maximumf %25, %26 : vector<32x1xf32>
    %c0_12 = arith.constant 0 : index
    %c0_13 = arith.constant 0 : index
    %28 = vector.load %arg4[%c0_12, %c0_13] : memref<32x1xf32, #tpu.memory_space<vmem>>, vector<32x1xf32>
    %cst_14 = arith.constant 9.99999974E-6 : f32
    %29 = vector.broadcast %cst_14 : f32 to vector<32x1xf32>
    %30 = arith.addf %27, %29 : vector<32x1xf32>
    %31 = math.rsqrt %30 : vector<32x1xf32>
    %32 = arith.mulf %28, %31 : vector<32x1xf32>
    %c0_15 = arith.constant 0 : index
    %c0_16 = arith.constant 0 : index
    %33 = vector.load %arg5[%c0_15, %c0_16] : memref<32x1xf32, #tpu.memory_space<vmem>>, vector<32x1xf32>
    %34 = arith.mulf %18, %32 : vector<32x1xf32>
    %35 = arith.subf %33, %34 : vector<32x1xf32>
    %c0_17 = arith.constant 0 : index
    %c0_18 = arith.constant 0 : index
    %36 = vector.load %arg6[%c0_17, %c0_18] : memref<16x32xf32, #tpu.memory_space<vmem>>, vector<16x32xf32>
    %37 = vector.broadcast %32 : vector<32x1xf32> to vector<32x384xf32>
    %38 = arith.mulf %14, %37 : vector<32x384xf32>
    %39 = vector.broadcast %35 : vector<32x1xf32> to vector<32x384xf32>
    %40 = arith.addf %38, %39 : vector<32x384xf32>
    %cst_19 = arith.constant dense<0.000000e+00> : vector<16x384xf32>
    %41 = tpu.matmul %36, %40, %cst_19 {dimension_numbers = #tpu.dot_dimension_numbers<[1], [0], [0], [1], [0, 0, 1, 1], [], []>} : vector<16x32xf32>, vector<32x384xf32>, vector<16x384xf32> -> vector<16x384xf32>
    %c0_20 = arith.constant 0 : index
    %c0_21 = arith.constant 0 : index
    %42 = vector.load %arg7[%c0_20, %c0_21] : memref<16x1xf32, #tpu.memory_space<vmem>>, vector<16x1xf32>
    %43 = vector.broadcast %42 : vector<16x1xf32> to vector<16x384xf32>
    %44 = arith.addf %41, %43 : vector<16x384xf32>
    %cst_22 = arith.constant 0.000000e+00 : f32
    %45 = vector.broadcast %cst_22 : f32 to vector<16x384xf32>
    %46 = arith.maximumf %44, %45 : vector<16x384xf32>
    %cst_23 = arith.constant 0.000000e+00 : f32
    %47 = vector.shape_cast %3 : vector<1x384xi1> to vector<1x384xi1>
    %48 = vector.broadcast %47 : vector<1x384xi1> to vector<16x384xi1>
    %49 = vector.broadcast %cst_23 : f32 to vector<16x384xf32>
    %50 = arith.select %48, %46, %49 : vector<16x384xi1>, vector<16x384xf32>
    %cst_24 = arith.constant dense<0.000000e+00> : vector<16xf32>
    %51 = vector.multi_reduction <add>, %50, %cst_24 [1] : vector<16x384xf32> to vector<16xf32>
    %52 = vector.shape_cast %51 : vector<16xf32> to vector<16x1xf32>
    %cst_25 = arith.constant 0.00333333341 : f32
    %53 = vector.broadcast %cst_25 : f32 to vector<16x1xf32>
    %54 = arith.mulf %52, %53 : vector<16x1xf32>
    %55 = arith.mulf %50, %50 : vector<16x384xf32>
    %cst_26 = arith.constant dense<0.000000e+00> : vector<16xf32>
    %56 = vector.multi_reduction <add>, %55, %cst_26 [1] : vector<16x384xf32> to vector<16xf32>
    %57 = vector.shape_cast %56 : vector<16xf32> to vector<16x1xf32>
    %cst_27 = arith.constant 0.00333333341 : f32
    %58 = vector.broadcast %cst_27 : f32 to vector<16x1xf32>
    %59 = arith.mulf %57, %58 : vector<16x1xf32>
    %60 = arith.mulf %54, %54 : vector<16x1xf32>
    %61 = arith.subf %59, %60 : vector<16x1xf32>
    %cst_28 = arith.constant 0.000000e+00 : f32
    %62 = vector.broadcast %cst_28 : f32 to vector<16x1xf32>
    %63 = arith.maximumf %61, %62 : vector<16x1xf32>
    %c0_29 = arith.constant 0 : index
    %c0_30 = arith.constant 0 : index
    %64 = vector.load %arg8[%c0_29, %c0_30] : memref<16x1xf32, #tpu.memory_space<vmem>>, vector<16x1xf32>
    %cst_31 = arith.constant 9.99999974E-6 : f32
    %65 = vector.broadcast %cst_31 : f32 to vector<16x1xf32>
    %66 = arith.addf %63, %65 : vector<16x1xf32>
    %67 = math.rsqrt %66 : vector<16x1xf32>
    %68 = arith.mulf %64, %67 : vector<16x1xf32>
    %c0_32 = arith.constant 0 : index
    %c0_33 = arith.constant 0 : index
    %69 = vector.load %arg9[%c0_32, %c0_33] : memref<16x1xf32, #tpu.memory_space<vmem>>, vector<16x1xf32>
    %70 = arith.mulf %54, %68 : vector<16x1xf32>
    %71 = arith.subf %69, %70 : vector<16x1xf32>
    %c0_34 = arith.constant 0 : index
    %c0_35 = arith.constant 0 : index
    %72 = vector.load %arg10[%c0_34, %c0_35] : memref<1x16xf32, #tpu.memory_space<vmem>>, vector<1x16xf32>
    %73 = vector.broadcast %68 : vector<16x1xf32> to vector<16x384xf32>
    %74 = arith.mulf %50, %73 : vector<16x384xf32>
    %75 = vector.broadcast %71 : vector<16x1xf32> to vector<16x384xf32>
    %76 = arith.addf %74, %75 : vector<16x384xf32>
    %cst_36 = arith.constant dense<0.000000e+00> : vector<1x384xf32>
    %77 = tpu.matmul %72, %76, %cst_36 {dimension_numbers = #tpu.dot_dimension_numbers<[1], [0], [0], [1], [0, 0, 1, 1], [], []>} : vector<1x16xf32>, vector<16x384xf32>, vector<1x384xf32> -> vector<1x384xf32>
    %c0_37 = arith.constant 0 : index
    %c0_38 = arith.constant 0 : index
    %78 = vector.load %arg11[%c0_37, %c0_38] : memref<1x1xf32, #tpu.memory_space<vmem>>, vector<1x1xf32>
    %79 = vector.broadcast %78 : vector<1x1xf32> to vector<1x384xf32>
    %80 = arith.addf %77, %79 : vector<1x384xf32>
    %81 = arith.negf %80 : vector<1x384xf32>
    %82 = math.exp %81 : vector<1x384xf32>
    %cst_39 = arith.constant 1.000000e+00 : f32
    %83 = vector.broadcast %cst_39 : f32 to vector<1x384xf32>
    %84 = arith.addf %83, %82 : vector<1x384xf32>
    %85 = arith.divf %83, %84 : vector<1x384xf32>
    %c0_40 = arith.constant 0 : index
    %c0_41 = arith.constant 0 : index
    %86 = vector.load %arg12[%c0_40, %c0_41] : memref<1x384xf32, #tpu.memory_space<vmem>>, vector<1x384xf32>
    tpu.vector_store %arg12[%c0_40, %c0_41], %85 {strides = array<i32>} : memref<1x384xf32, #tpu.memory_space<vmem>>, vector<1x384xf32>,
    return
  }
  func.func @transform_0(%arg0: i32) -> (i32, i32) {
    %c0_i32 = arith.constant 0 : i32
    %c0_i32_0 = arith.constant 0 : i32
    %c0_i32_1 = arith.constant 0 : i32
    return %c0_i32, %c0_i32_0 : i32, i32
  }
  func.func @transform_1(%arg0: i32) -> (i32, i32) {
    %c0_i32 = arith.constant 0 : i32
    %c0_i32_0 = arith.constant 0 : i32
    %c0_i32_1 = arith.constant 0 : i32
    return %c0_i32, %c0_i32_0 : i32, i32
  }
  func.func @transform_2(%arg0: i32) -> (i32, i32) {
    %c0_i32 = arith.constant 0 : i32
    %c0_i32_0 = arith.constant 0 : i32
    %c0_i32_1 = arith.constant 0 : i32
    return %c0_i32, %c0_i32_0 : i32, i32
  }
  func.func @transform_3(%arg0: i32) -> (i32, i32) {
    %c0_i32 = arith.constant 0 : i32
    %c0_i32_0 = arith.constant 0 : i32
    %c0_i32_1 = arith.constant 0 : i32
    return %c0_i32, %c0_i32_0 : i32, i32
  }
  func.func @transform_4(%arg0: i32) -> (i32, i32) {
    %c0_i32 = arith.constant 0 : i32
    %c0_i32_0 = arith.constant 0 : i32
    %c0_i32_1 = arith.constant 0 : i32
    return %c0_i32, %c0_i32_0 : i32, i32
  }
  func.func @transform_5(%arg0: i32) -> (i32, i32) {
    %c0_i32 = arith.constant 0 : i32
    %c0_i32_0 = arith.constant 0 : i32
    %c0_i32_1 = arith.constant 0 : i32
    return %c0_i32, %c0_i32_0 : i32, i32
  }
  func.func @transform_6(%arg0: i32) -> (i32, i32) {
    %c0_i32 = arith.constant 0 : i32
    %c0_i32_0 = arith.constant 0 : i32
    %c0_i32_1 = arith.constant 0 : i32
    return %c0_i32, %c0_i32_0 : i32, i32
  }
  func.func @transform_7(%arg0: i32) -> (i32, i32) {
    %c0_i32 = arith.constant 0 : i32
    %c0_i32_0 = arith.constant 0 : i32
    %c0_i32_1 = arith.constant 0 : i32
    return %c0_i32, %c0_i32_0 : i32, i32
  }
  func.func @transform_8(%arg0: i32) -> (i32, i32) {
    %c0_i32 = arith.constant 0 : i32
    %c0_i32_0 = arith.constant 0 : i32
    %c0_i32_1 = arith.constant 0 : i32
    return %c0_i32, %c0_i32_0 : i32, i32
  }
  func.func @transform_9(%arg0: i32) -> (i32, i32) {
    %c0_i32 = arith.constant 0 : i32
    %c0_i32_0 = arith.constant 0 : i32
    %c0_i32_1 = arith.constant 0 : i32
    return %c0_i32, %c0_i32_0 : i32, i32
  }
  func.func @transform_10(%arg0: i32) -> (i32, i32) {
    %c0_i32 = arith.constant 0 : i32
    %c0_i32_0 = arith.constant 0 : i32
    %c0_i32_1 = arith.constant 0 : i32
    return %c0_i32, %c0_i32_0 : i32, i32
  }
  func.func @transform_11(%arg0: i32) -> (i32, i32) {
    %c0_i32 = arith.constant 0 : i32
    %c0_i32_0 = arith.constant 0 : i32
    %c0_i32_1 = arith.constant 0 : i32
    return %c0_i32, %c0_i32_0 : i32, i32
  }
}

</mosaic_0001>

<bundles_post_ra>
// kernel: tpu_custom_call.1
= control target key start
LH: loop header
LB: loop body
LE: loop exit
PB: predicated region body
PF: predicated region fallthrough
CT: control target
= control target key end

     0   :  { %s1173_s0 = inlined_call_operand.vmem [shape: f32[10,384], index: 0, kind: input, shape index: {}]   ;;  %s1174_s1 = inlined_call_operand.vmem [shape: f32[32,10], index: 1, kind: input, shape index: {}]   ;;  %s1175_s2 = inlined_call_operand.vmem [shape: f32[32,1], index: 2, kind: input, shape index: {}]   ;;  %s1176_s3 = inlined_call_operand.vmem [shape: f32[32,1], index: 3, kind: input, shape index: {}]   ;;  %s1177_s4 = inlined_call_operand.vmem [shape: f32[32,1], index: 4, kind: input, shape index: {}]   ;;  %s1178_s5 = inlined_call_operand.vmem [shape: f32[16,32], index: 5, kind: input, shape index: {}]   ;;  %s1179_s6 = inlined_call_operand.vmem [shape: f32[16,1], index: 6, kind: input, shape index: {}]   ;;  %s1180_s7 = inlined_call_operand.vmem [shape: f32[16,1], index: 7, kind: input, shape index: {}]   ;;  %s1181_s8 = inlined_call_operand.vmem [shape: f32[16,1], index: 8, kind: input, shape index: {}]   ;;  %s1182_s9 = inlined_call_operand.vmem [shape: f32[1,16], index: 9, kind: input, shape index: {}]   ;;  %s1183_s10 = inlined_call_operand.<no memory space> [shape: f32[1,1], index: 10, kind: input, shape index: {}]   ;;  %s1184_s11 = inlined_call_operand.hbm [shape: f32[1,384], index: 11, kind: output, shape index: {}]  }
   0x1   :  { %v16_v0 = vstv %s1183_s10 }
   0x2   :  { %17 = vst [vmem:[#allocation2] sm:$0x1] %v16_v0 }
   0x3   :  { %v44_v1 = vld [vmem:[%s1173_s0 + $0x18] sm:$0x3]  ;;  %vm95_vm0 = vcmask 1041408   ;;  %v45_v2 = vld [vmem:[%s1173_s0 + $0x20] sm:$0x3]  ;;  %v42_v5 = vld [vmem:[%s1173_s0 + $0x8] sm:$0xff] }
   0x4   :  { %v41_v3 = vld [vmem:[%s1173_s0] sm:$0xff]  ;;  %771 = vmatpush.msk.msra.mxu0 %vm95_vm0, %v44_v1  ;;  %776 = vmatpush.msk.msra.mxu1 %vm95_vm0, %v45_v2  ;;  %v46_v4 = vld [vmem:[%s1173_s0 + $0x28] sm:$0x3]  ;;  %v43_v6 = vld [vmem:[%s1173_s0 + $0x10] sm:$0xff]  ;;  %vm82_vm1 = vcmask 80896   ;;  %v853_v8 = vmov 0  }
   0x5   :  { %781 = vmatpush.msk.msra.mxu2 %vm95_vm0, %v46_v4  ;;  %v54_v7 = vld [vmem:[%s1174_s1] sm:$0xff]  ;;  %801 = vset.pattern.permute.xlu1 %v853_v8  ;;  %v59_v9 = vld [vmem:[%s1175_s2 + $0x8] sm:$0xff]  ;;  %v61_v10 = vld [vmem:[%s1175_s2 + $0x18] sm:$0xff] }
   0x6   :  { %120 = vmatpush.msra.mxu0 %v41_v3  ;;  %149 = vmatpush.msra.mxu1 %v42_v5 }
   0x7   :  { %178 = vmatpush.msra.mxu2 %v43_v6  ;;  %772 = vmatmul.msk.f32.vlgmr.msra.gmra.mxu0 %vm82_vm1, %v54_v7 }
   0x8   :  { %18 = vsyncpa [#allocation4], 0  ;;  %777 = vmatmul.msk.f32.vlgmr.msra.gmra.mxu1 %vm82_vm1, %v54_v7  ;;  %782 = vmatmul.msk.f32.vlgmr.msra.gmra.mxu2 %vm82_vm1, %v54_v7  ;;  %v55_v11 = vld [vmem:[%s1174_s1 + $0x8] sm:$0xff]  ;;  %v58_v12 = vld [vmem:[%s1175_s2] sm:$0xff]  ;;  %v47_v19 = vlaneseq  ;;  %vm428_vm15 = vcmask 261120   ;;  %s762_s12 = sshll.u32 %s1184_s11, 4  ;;  %s763_s12 = int_to_ptr.hbm [resolvable:$true] %s762_s12 }
   0x9   :  { %69 = vperm.xlu1 %801, %v59_v9   ;;  %800 = vset.pattern.permute.xlu0 %v853_v8  ;;  %v60_v13 = vld [vmem:[%s1175_s2 + $0x10] sm:$0xff]  ;;  %v57_v15 = vld [vmem:[%s1174_s1 + $0x18] sm:$0xff] }
   0xa   :  { %79 = vperm.xlu0 %800, %v61_v10   ;;  %802 = vset.pattern.permute.xlu2 %v853_v8  ;;  %v56_v14 = vld [vmem:[%s1174_s1 + $0x10] sm:$0xff]  ;;  %v48_v26 = vand.u32 127, %v47_v19 }
   0xc   :  { %v980_v29 = vadd.s32 256, %v48_v26 }
   0xe   :  { %vm53_vm2 = vcmp.lt.s32.totalorder %v980_v29, 300 }
   0xf   :  { %773 = vmatmul.msk.f32.gmra.mxu0 %vm82_vm1, %v55_v11 }
  0x10   :  { %778 = vmatmul.msk.f32.gmra.mxu1 %vm82_vm1, %v55_v11  ;;  %783 = vmatmul.msk.f32.gmra.mxu2 %vm82_vm1, %v55_v11 }
  0x11   :  { %64 = vperm.xlu1 %801, %v58_v12  }
  0x12   :  { %74 = vperm.xlu0 %800, %v60_v13  }
  0x17   :  { %774 = vmatmul.msk.f32.gmra.mxu0 %vm82_vm1, %v56_v14 }
  0x18   :  { %779 = vmatmul.msk.f32.gmra.mxu1 %vm82_vm1, %v56_v14  ;;  %784 = vmatmul.msk.f32.gmra.mxu2 %vm82_vm1, %v56_v14 }
  0x1f   :  { %775 = vmatmul.msk.f32.gmra.mxu0 %vm82_vm1, %v57_v15 }
  0x20   :  { %780 = vmatmul.msk.f32.gmra.mxu1 %vm82_vm1, %v57_v15  ;;  %785 = vmatmul.msk.f32.gmra.mxu2 %vm82_vm1, %v57_v15 }
  0x7b   :  { %v70_v18 = vpop.permute.xlu1 %69 }
  0x7c   :  { %v80_v21 = vpop.permute.xlu0 %79 }
  0x83   :  { %v65_v1 = vpop.permute.xlu1 %64 }
  0x84   :  { %v122_v16 = vpop.f32.mrf.mxu0  ;;  %v75_v35 = vpop.permute.xlu0 %74 }
  0x85   :  { %v151_v17 = vpop.f32.mrf.mxu1  ;;  %v123_v5 = vadd.f32 %v122_v16, %v65_v1 }
  0x86   :  { %v152_v6 = vadd.f32 %v151_v17, %v65_v1 }
  0x87   :  { %v1024_v10 = vmax.f32 %v123_v5, 0.0  ;;  %v289_v5 = vld [vmem:[%s1176_s3 + $0x18] sm:$0xff] }
  0x88   :  { %v1026_v11 = vmax.f32 %v152_v6, 0.0 }
  0x8a   :  { %v222_v14 = vadd.f32 %v1026_v11, %v1024_v10 }
  0x8b   :  { %v180_v20 = vpop.f32.mrf.mxu2 }
  0x8c   :  { %v125_v22 = vpop.f32.mrf.mxu0  ;;  %v181_v8 = vadd.f32 %v180_v20, %v65_v1 }
  0x8d   :  { %v126_v23 = vadd.f32 %v125_v22, %v70_v18  ;;  %v154_v24 = vpop.f32.mrf.mxu1 }
  0x8e   :  { %v155_v25 = vadd.f32 %v154_v24, %v70_v18  ;;  %v194_v13 = vmax.f32 %v181_v8, 0.0  ;;  %v243_v24 = vmul.f32 %v1026_v11, %v1026_v11 }
  0x8f   :  { %v976_v27 = vmax.f32 %v126_v23, 0.0  ;;  %v242_v23 = vmul.f32 %v1024_v10, %v1024_v10 }
  0x90   :  { %v978_v28 = vmax.f32 %v155_v25, 0.0  ;;  %v1032_v15 = vsel %vm53_vm2, %v194_v13, 0.0 }
  0x91   :  { %v223_v16 = vadd.f32 %v222_v14, %v1032_v15  ;;  %v245_v17 = vmul.f32 %v976_v27, %v976_v27  ;;  %v244_v25 = vmul.f32 %v1032_v15, %v1032_v15  ;;  %v254_v26 = vadd.f32 %v243_v24, %v242_v23 }
  0x92   :  { %v226_v34 = vadd.f32 %v978_v28, %v976_v27 }
  0x93   :  { %v183_v30 = vpop.f32.mrf.mxu2 }
  0x94   :  { %v184_v31 = vadd.f32 %v183_v30, %v70_v18  ;;  %v128_v32 = vpop.f32.mrf.mxu0  ;;  %v246_v18 = vmul.f32 %v978_v28, %v978_v28  ;;  %v255_v30 = vadd.f32 %v254_v26, %v244_v25 }
  0x95   :  { %v157_v33 = vpop.f32.mrf.mxu1  ;;  %v129_v37 = vadd.f32 %v128_v32, %v75_v35 }
  0x96   :  { %v197_v36 = vmax.f32 %v184_v31, 0.0  ;;  %v158_v38 = vadd.f32 %v157_v33, %v75_v35 }
  0x97   :  { %v990_v41 = vmax.f32 %v129_v37, 0.0 }
  0x98   :  { %v987_v39 = vsel %vm53_vm2, %v197_v36, 0.0  ;;  %v992_v42 = vmax.f32 %v158_v38, 0.0 }
  0x99   :  { %v227_v40 = vadd.f32 %v226_v34, %v987_v39  ;;  %v248_v3 = vmul.f32 %v990_v41, %v990_v41  ;;  %v247_v20 = vmul.f32 %v987_v39, %v987_v39 }
  0x9a   :  { %v230_v50 = vadd.f32 %v992_v42, %v990_v41  ;;  %v249_v4 = vmul.f32 %v992_v42, %v992_v42 }
  0x9b   :  { %v186_v43 = vpop.f32.mrf.mxu2  ;;  %228 = vadd.xlane.f32.xlu1 %v227_v40 }
  0x9c   :  { %v187_v44 = vadd.f32 %v186_v43, %v75_v35  ;;  %v131_v45 = vpop.f32.mrf.mxu0  ;;  %v262_v9 = vadd.f32 %v249_v4, %v248_v3 }
  0x9d   :  { %v132_v46 = vadd.f32 %v131_v45, %v80_v21  ;;  %v160_v47 = vpop.f32.mrf.mxu1 }
  0x9e   :  { %v200_v48 = vmax.f32 %v187_v44, 0.0  ;;  %v161_v49 = vadd.f32 %v160_v47, %v80_v21 }
  0x9f   :  { %v1000_v52 = vmax.f32 %v132_v46, 0.0 }
  0xa0   :  { %v998_v51 = vsel %vm53_vm2, %v200_v48, 0.0  ;;  %v1002_v53 = vmax.f32 %v161_v49, 0.0 }
  0xa1   :  { %v231_v54 = vadd.f32 %v230_v50, %v998_v51  ;;  %v251_v57 = vmul.f32 %v1000_v52, %v1000_v52  ;;  %v250_v7 = vmul.f32 %v998_v51, %v998_v51 }
  0xa2   :  { %v252_v58 = vmul.f32 %v1002_v53, %v1002_v53  ;;  %v234_v60 = vadd.f32 %v1002_v53, %v1000_v52 }
  0xa3   :  { %v189_v55 = vpop.f32.mrf.mxu2  ;;  %232 = vadd.xlane.f32.xlu2 %v231_v54  ;;  %v263_v12 = vadd.f32 %v262_v9, %v250_v7 }
  0xa4   :  { %v190_v56 = vadd.f32 %v189_v55, %v80_v21  ;;  %v266_v0 = vadd.f32 %v252_v58, %v251_v57  ;;  %v258_v21 = vadd.f32 %v246_v18, %v245_v17 }
  0xa6   :  { %v203_v59 = vmax.f32 %v190_v56, 0.0  ;;  %v259_v22 = vadd.f32 %v258_v21, %v247_v20  ;;  %v288_v21 = vld [vmem:[%s1176_s3 + $0x10] sm:$0xff] }
  0xa8   :  { %v1013_v61 = vsel %vm53_vm2, %v203_v59, 0.0 }
  0xa9   :  { %v235_v62 = vadd.f32 %v234_v60, %v1013_v61  ;;  %v253_v63 = vmul.f32 %v1013_v61, %v1013_v61 }
  0xab   :  { %236 = vadd.xlane.f32.xlu2 %v235_v62  ;;  %v267_v2 = vadd.f32 %v266_v0, %v253_v63 }
  0xad   :  { %268 = vadd.xlane.f32.xlu0 %v267_v2 }
  0xb3   :  { %264 = vadd.xlane.f32.xlu2 %v263_v12 }
  0xbb   :  { %224 = vadd.xlane.f32.xlu2 %v223_v16  ;;  %v341_v16 = vld [vmem:[%s1177_s4 + $0x18] sm:$0xff] }
  0xc3   :  { %260 = vadd.xlane.f32.xlu2 %v259_v22 }
  0xcb   :  { %256 = vadd.xlane.f32.xlu2 %v255_v30 }
 0x10e   :  { %v229_v55 = vpop.xlane.xlu1 %228 }
 0x10f   :  { %v1047_v58 = vmul.f32 0.0033333334, %v229_v55 }
 0x111   :  { %v275_v1 = vmul.f32 %v1047_v58, %v1047_v58 }
 0x116   :  { %v233_v31 = vpop.xlane.xlu2 %232 }
 0x117   :  { %v240_v37 = vmul.f32 0.0033333334, %v233_v31 }
 0x119   :  { %v276_v44 = vmul.f32 %v240_v37, %v240_v37 }
 0x11e   :  { %v237_v32 = vpop.xlane.xlu2 %236 }
 0x11f   :  { %v241_v33 = vmul.f32 0.0033333334, %v237_v32 }
 0x120   :  { %v269_v34 = vpop.xlane.xlu0 %268 }
 0x121   :  { %v277_v35 = vmul.f32 %v241_v33, %v241_v33  ;;  %v273_v36 = vmul.f32 0.0033333334, %v269_v34 }
 0x123   :  { %v281_v38 = vsub.f32 %v273_v36, %v277_v35 }
 0x125   :  { %v285_v40 = vmax.f32 %v281_v38, 0.0  ;;  %v340_v38 = vld [vmem:[%s1177_s4 + $0x10] sm:$0xff] }
 0x126   :  { %v265_v43 = vpop.xlane.xlu2 %264 }
 0x127   :  { %v293_v45 = vadd.f32 1e-05, %v285_v40  ;;  %v272_v46 = vmul.f32 0.0033333334, %v265_v43 }
 0x129   :  { %803 = vrsqrt.f32 %v293_v45  ;;  %v280_v47 = vsub.f32 %v272_v46, %v276_v44  ;;  %vm330_vm4 = vweird.f32 %v293_v45 }
 0x12b   :  { %v284_v48 = vmax.f32 %v280_v47, 0.0 }
 0x12d   :  { %v292_v49 = vadd.f32 1e-05, %v284_v48  ;;  %v287_v48 = vld [vmem:[%s1176_s3 + $0x8] sm:$0xff] }
 0x12e   :  { %v225_v50 = vpop.xlane.xlu2 %224 }
 0x12f   :  { %v804_v54 = vpop.eup %803  ;;  %805 = vrsqrt.f32 %v292_v49  ;;  %v238_v9 = vmul.f32 0.0033333334, %v225_v50  ;;  %vm320_vm7 = vweird.f32 %v292_v49 }
 0x130   :  { %v325_v56 = vmul.f32 %v804_v54, %v293_v45  ;;  %vm331_vm3 = vweird.f32 %v804_v54 }
 0x131   :  { %vm332_vm5 = vmor %vm330_vm4, %vm331_vm3  ;;  %v274_v23 = vmul.f32 %v238_v9, %v238_v9 }
 0x132   :  { %v326_v57 = vmul.f32 %v804_v54, %v325_v56  ;;  %v339_v56 = vld [vmem:[%s1177_s4 + $0x8] sm:$0xff] }
 0x134   :  { %v327_v59 = vmul.f32 0.5, %v326_v57 }
 0x135   :  { %v806_v60 = vpop.eup %805 }
 0x136   :  { %v328_v62 = vsub.f32 1.5, %v327_v59  ;;  %v315_v63 = vmul.f32 %v806_v60, %v292_v49  ;;  %v261_v0 = vpop.xlane.xlu2 %260  ;;  %vm321_vm6 = vweird.f32 %v806_v60 }
 0x137   :  { %v271_v2 = vmul.f32 0.0033333334, %v261_v0  ;;  %vm322_vm8 = vmor %vm320_vm7, %vm321_vm6  ;;  %vm620_vm7 = vcmask 130048  }
 0x138   :  { %v329_v3 = vmul.f32 %v804_v54, %v328_v62  ;;  %v316_v4 = vmul.f32 %v806_v60, %v315_v63  ;;  %v286_v63 = vld [vmem:[%s1176_s3] sm:$0xff] }
 0x139   :  { %v279_v6 = vsub.f32 %v271_v2, %v275_v1  ;;  %v338_v2 = vld [vmem:[%s1177_s4] sm:$0xff] }
 0x13a   :  { %v317_v7 = vmul.f32 0.5, %v316_v4  ;;  %v333_v8 = vsel %vm332_vm5, %v804_v54, %v329_v3 }
 0x13b   :  { %v283_v12 = vmax.f32 %v279_v6, 0.0  ;;  %v337_v13 = vmul.f32 %v333_v8, %v289_v5  ;;  %v417_v5 = vld [vmem:[%s1179_s6 + $0x8] sm:$0xff] }
 0x13c   :  { %v318_v14 = vsub.f32 1.5, %v317_v7 }
 0x13d   :  { %v291_v17 = vadd.f32 1e-05, %v283_v12  ;;  %v345_v18 = vmul.f32 %v337_v13, %v241_v33 }
 0x13e   :  { %v257_v20 = vpop.xlane.xlu2 %256  ;;  %v319_v22 = vmul.f32 %v806_v60, %v318_v14 }
 0x13f   :  { %807 = vrsqrt.f32 %v291_v17  ;;  %v270_v24 = vmul.f32 0.0033333334, %v257_v20  ;;  %v349_v25 = vsub.f32 %v341_v16, %v345_v18  ;;  %vm310_vm10 = vweird.f32 %v291_v17 }
 0x140   :  { %v323_v26 = vsel %vm322_vm8, %v806_v60, %v319_v22 }
 0x141   :  { %v278_v30 = vsub.f32 %v270_v24, %v274_v23  ;;  %401 = vperm.xlu1 %801, %v349_v25   ;;  %v336_v31 = vmul.f32 %v323_v26, %v288_v21 }
 0x143   :  { %v282_v32 = vmax.f32 %v278_v30, 0.0  ;;  %364 = vperm.xlu0 %800, %v336_v31   ;;  %v344_v35 = vmul.f32 %v336_v31, %v240_v37 }
 0x145   :  { %v808_v34 = vpop.eup %807  ;;  %v290_v33 = vadd.f32 1e-05, %v282_v32  ;;  %v348_v43 = vsub.f32 %v340_v38, %v344_v35  ;;  %v351_v38 = vld [vmem:[%s1178_s5 + $0x8] sm:$0xff] }
 0x146   :  { %v305_v36 = vmul.f32 %v808_v34, %v291_v17  ;;  %vm311_vm9 = vweird.f32 %v808_v34 }
 0x147   :  { %809 = vrsqrt.f32 %v290_v33  ;;  %vm312_vm11 = vmor %vm310_vm10, %vm311_vm9  ;;  %vm300_vm13 = vweird.f32 %v290_v33 }
 0x148   :  { %v306_v40 = vmul.f32 %v808_v34, %v305_v36 }
 0x14a   :  { %v307_v44 = vmul.f32 0.5, %v306_v40 }
 0x14b   :  { %396 = vperm.xlu0 %800, %v348_v43  }
 0x14c   :  { %v308_v45 = vsub.f32 1.5, %v307_v44 }
 0x14d   :  { %v810_v46 = vpop.eup %809 }
 0x14e   :  { %v295_v47 = vmul.f32 %v810_v46, %v290_v33  ;;  %v309_v37 = vmul.f32 %v808_v34, %v308_v45  ;;  %vm301_vm12 = vweird.f32 %v810_v46 }
 0x14f   :  { %vm302_vm14 = vmor %vm300_vm13, %vm301_vm12 }
 0x150   :  { %v296_v49 = vmul.f32 %v810_v46, %v295_v47  ;;  %v313_v50 = vsel %vm312_vm11, %v808_v34, %v309_v37 }
 0x151   :  { %v335_v54 = vmul.f32 %v313_v50, %v287_v48 }
 0x152   :  { %v297_v55 = vmul.f32 0.5, %v296_v49 }
 0x153   :  { %359 = vperm.xlu2 %802, %v335_v54   ;;  %v343_v57 = vmul.f32 %v335_v54, %v1047_v58  ;;  %v416_v58 = vld [vmem:[%s1179_s6] sm:$0xff] }
 0x154   :  { %v298_v59 = vsub.f32 1.5, %v297_v55 }
 0x155   :  { %v347_v60 = vsub.f32 %v339_v56, %v343_v57 }
 0x156   :  { %v299_v62 = vmul.f32 %v810_v46, %v298_v59 }
 0x157   :  { %391 = vperm.xlu1 %801, %v347_v60  }
 0x158   :  { %v303_v0 = vsel %vm302_vm14, %v810_v46, %v299_v62 }
 0x159   :  { %v334_v1 = vmul.f32 %v303_v0, %v286_v63 }
 0x15b   :  { %369 = vperm.xlu2 %802, %v337_v13   ;;  %v342_v3 = vmul.f32 %v334_v1, %v238_v9 }
 0x15d   :  { %v346_v4 = vsub.f32 %v338_v2, %v342_v3 }
 0x15f   :  { %420 = vperm.xlu1 %801, %v416_v58   ;;  %386 = vperm.xlu0 %800, %v346_v4  }
 0x163   :  { %354 = vperm.xlu2 %802, %v334_v1  }
 0x16b   :  { %425 = vperm.xlu2 %802, %v417_v5  }
 0x1ad   :  { %v360_v6 = vpop.permute.xlu2 %359 }
 0x1ae   :  { %v375_v23 = vmul.f32 %v360_v6, %v976_v27  ;;  %v350_v27 = vld [vmem:[%s1178_s5] sm:$0xff] }
 0x1b3   :  { %v402_v13 = vpop.permute.xlu1 %401 }
 0x1b5   :  { %v365_v7 = vpop.permute.xlu0 %364  ;;  %v370_v8 = vpop.permute.xlu2 %369 }
 0x1b6   :  { %v381_v12 = vmul.f32 %v370_v8, %v1000_v52  ;;  %v383_v9 = vmul.f32 %v370_v8, %v1013_v61  ;;  %v378_v17 = vmul.f32 %v365_v7, %v990_v41  ;;  %v380_v18 = vmul.f32 %v365_v7, %v998_v51 }
 0x1b7   :  { %v377_v52 = vmul.f32 %v360_v6, %v987_v39  ;;  %v382_v51 = vmul.f32 %v370_v8, %v1002_v53  ;;  %v379_v33 = vmul.f32 %v365_v7, %v992_v42  ;;  %v376_v53 = vmul.f32 %v360_v6, %v978_v28 }
 0x1b8   :  { %v413_v14 = vadd.f32 %v402_v13, %v381_v12  ;;  %v415_v16 = vadd.f32 %v402_v13, %v383_v9 }
 0x1b9   :  { %v414_v39 = vadd.f32 %v402_v13, %v382_v51 }
 0x1ba   :  { %447 = vmatpush.msra.mxu3 %v413_v14  ;;  %493 = vmatpush.msrb.mxu0 %v415_v16 }
 0x1bd   :  { %v397_v20 = vpop.permute.xlu0 %396  ;;  %v355_v26 = vpop.permute.xlu2 %354 }
 0x1be   :  { %v410_v21 = vadd.f32 %v397_v20, %v378_v17  ;;  %v412_v22 = vadd.f32 %v397_v20, %v380_v18  ;;  %v372_v30 = vmul.f32 %v355_v26, %v1024_v10  ;;  %v374_v41 = vmul.f32 %v355_v26, %v1032_v15 }
 0x1bf   :  { %v411_v10 = vadd.f32 %v397_v20, %v379_v33  ;;  %v373_v35 = vmul.f32 %v355_v26, %v1026_v11 }
 0x1c0   :  { %448 = vmatpush.msra.mxu3 %v410_v21  ;;  %494 = vmatpush.msrb.mxu0 %v412_v22 }
 0x1c5   :  { %v426_v37 = vpop.permute.xlu2 %425 }
 0x1c9   :  { %v392_v24 = vpop.permute.xlu1 %391 }
 0x1ca   :  { %v407_v61 = vadd.f32 %v392_v24, %v375_v23  ;;  %v409_v25 = vadd.f32 %v392_v24, %v377_v52  ;;  %v408_v15 = vadd.f32 %v392_v24, %v376_v53 }
 0x1cc   :  { %449 = vmatpush.msra.mxu3 %v407_v61  ;;  %495 = vmatpush.msrb.mxu0 %v409_v25 }
 0x1d1   :  { %v387_v31 = vpop.permute.xlu0 %386  ;;  %v421_v43 = vpop.permute.xlu1 %420 }
 0x1d2   :  { %v404_v32 = vadd.f32 %v387_v31, %v372_v30  ;;  %v406_v34 = vadd.f32 %v387_v31, %v374_v41  ;;  %v405_v36 = vadd.f32 %v387_v31, %v373_v35  ;;  %v549_v35 = vld [vmem:[%s1180_s7 + $0x8] sm:$0xff] }
 0x1d4   :  { %450 = vmatpush.msra.mxu3 %v404_v32  ;;  %496 = vmatpush.msrb.mxu0 %v406_v34 }
 0x1d5   :  { %786 = vmatmul.msk.f32.vlgmr.msra.gmra.mxu3 %vm428_vm15, %v350_v27  ;;  %790 = vmatmul.msk.f32.vlgmr.msrb.gmra.mxu0 %vm428_vm15, %v350_v27 }
 0x1d6   :  { %470 = vmatpush.msrb.mxu3 %v414_v39 }
 0x1d8   :  { %471 = vmatpush.msrb.mxu3 %v411_v10 }
 0x1da   :  { %472 = vmatpush.msrb.mxu3 %v408_v15 }
 0x1dc   :  { %473 = vmatpush.msrb.mxu3 %v405_v36 }
 0x1dd   :  { %787 = vmatmul.msk.f32.gmra.mxu3 %vm428_vm15, %v351_v38  ;;  %791 = vmatmul.msk.f32.gmra.mxu0 %vm428_vm15, %v351_v38 }
 0x1e5   :  { %788 = vmatmul.msk.f32.vlgmr.msrb.gmra.mxu3 %vm428_vm15, %v350_v27 }
 0x1ed   :  { %789 = vmatmul.msk.f32.gmra.mxu3 %vm428_vm15, %v351_v38 }
 0x252   :  { %v498_v42 = vpop.f32.mrf.mxu0 }
 0x253   :  { %v499_v11 = vadd.f32 %v498_v42, %v421_v43 }
 0x255   :  { %v506_v48 = vmax.f32 %v499_v11, 0.0 }
 0x257   :  { %v1114_v57 = vsel %vm53_vm2, %v506_v48, 0.0 }
 0x258   :  { %v452_v28 = vpop.f32.mrf.mxu3  ;;  %v528_v13 = vmul.f32 %v1114_v57, %v1114_v57 }
 0x259   :  { %v453_v44 = vadd.f32 %v452_v28, %v421_v43 }
 0x25a   :  { %v501_v46 = vpop.f32.mrf.mxu0 }
 0x25b   :  { %v1106_v49 = vmax.f32 %v453_v44, 0.0  ;;  %v502_v54 = vadd.f32 %v501_v46, %v426_v37  ;;  %v548_v44 = vld [vmem:[%s1180_s7] sm:$0xff] }
 0x25d   :  { %v509_v60 = vmax.f32 %v502_v54, 0.0  ;;  %v526_v12 = vmul.f32 %v1106_v49, %v1106_v49 }
 0x25f   :  { %v1123_v2 = vsel %vm53_vm2, %v509_v60, 0.0 }
 0x260   :  { %v455_v40 = vpop.f32.mrf.mxu3  ;;  %v531_v6 = vmul.f32 %v1123_v2, %v1123_v2 }
 0x261   :  { %v456_v55 = vadd.f32 %v455_v40, %v426_v37 }
 0x263   :  { %v1117_v63 = vmax.f32 %v456_v55, 0.0 }
 0x265   :  { %v529_v58 = vmul.f32 %v1117_v63, %v1117_v63 }
 0x268   :  { %v475_v45 = vpop.f32.mrf.mxu3 }
 0x269   :  { %v476_v47 = vadd.f32 %v475_v45, %v421_v43  ;;  %v575_v43 = vld [vmem:[%s1181_s8 + $0x8] sm:$0xff] }
 0x26b   :  { %v1108_v50 = vmax.f32 %v476_v47, 0.0 }
 0x26d   :  { %v516_v56 = vadd.f32 %v1108_v50, %v1106_v49  ;;  %v527_v29 = vmul.f32 %v1108_v50, %v1108_v50 }
 0x26f   :  { %v517_v59 = vadd.f32 %v516_v56, %v1114_v57  ;;  %v532_v9 = vadd.f32 %v527_v29, %v526_v12  ;;  %v613_v56 = vld [vmem:[#allocation2] sm:$0x1] }
 0x270   :  { %v478_v62 = vpop.f32.mrf.mxu3 }
 0x271   :  { %v479_v0 = vadd.f32 %v478_v62, %v426_v37  ;;  %518 = vadd.xlane.f32.xlu2 %v517_v59  ;;  %v533_v14 = vadd.f32 %v532_v9, %v528_v13  ;;  %v574_v37 = vld [vmem:[%s1181_s8] sm:$0xff] }
 0x273   :  { %v1119_v1 = vmax.f32 %v479_v0, 0.0 }
 0x275   :  { %v520_v3 = vadd.f32 %v1119_v1, %v1117_v63  ;;  %v530_v4 = vmul.f32 %v1119_v1, %v1119_v1 }
 0x277   :  { %v521_v5 = vadd.f32 %v520_v3, %v1123_v2  ;;  %v536_v7 = vadd.f32 %v530_v4, %v529_v58 }
 0x279   :  { %522 = vadd.xlane.f32.xlu0 %v521_v5  ;;  %v537_v8 = vadd.f32 %v536_v7, %v531_v6 }
 0x27b   :  { %538 = vadd.xlane.f32.xlu1 %v537_v8 }
 0x281   :  { %534 = vadd.xlane.f32.xlu0 %v533_v14 }
 0x2e4   :  { %v519_v18 = vpop.xlane.xlu2 %518 }
 0x2e5   :  { %v524_v23 = vmul.f32 0.0033333334, %v519_v18 }
 0x2e7   :  { %v542_v25 = vmul.f32 %v524_v23, %v524_v23 }
 0x2ec   :  { %v523_v16 = vpop.xlane.xlu0 %522 }
 0x2ed   :  { %v525_v17 = vmul.f32 0.0033333334, %v523_v16 }
 0x2ee   :  { %v539_v20 = vpop.xlane.xlu1 %538 }
 0x2ef   :  { %v543_v21 = vmul.f32 %v525_v17, %v525_v17  ;;  %v541_v22 = vmul.f32 0.0033333334, %v539_v20 }
 0x2f1   :  { %v545_v52 = vsub.f32 %v541_v22, %v543_v21 }
 0x2f3   :  { %v547_v24 = vmax.f32 %v545_v52, 0.0 }
 0x2f4   :  { %v535_v61 = vpop.xlane.xlu0 %534 }
 0x2f5   :  { %v551_v26 = vadd.f32 1e-05, %v547_v24  ;;  %v540_v30 = vmul.f32 0.0033333334, %v535_v61 }
 0x2f7   :  { %811 = vrsqrt.f32 %v551_v26  ;;  %v544_v41 = vsub.f32 %v540_v30, %v542_v25  ;;  %vm568_vm2 = vweird.f32 %v551_v26 }
 0x2f9   :  { %v546_v51 = vmax.f32 %v544_v41, 0.0 }
 0x2fb   :  { %v550_v31 = vadd.f32 1e-05, %v546_v51 }
 0x2fd   :  { %v812_v32 = vpop.eup %811  ;;  %813 = vrsqrt.f32 %v550_v31  ;;  %vm558_vm5 = vweird.f32 %v550_v31 }
 0x2fe   :  { %v563_v34 = vmul.f32 %v812_v32, %v551_v26  ;;  %vm569_vm1 = vweird.f32 %v812_v32 }
 0x2ff   :  { %vm570_vm3 = vmor %vm568_vm2, %vm569_vm1  ;;  %vm746_vm1 = vcmask 1040384  }
 0x300   :  { %v564_v27 = vmul.f32 %v812_v32, %v563_v34 }
 0x302   :  { %v565_v39 = vmul.f32 0.5, %v564_v27 }
 0x303   :  { %v814_v33 = vpop.eup %813 }
 0x304   :  { %v566_v10 = vsub.f32 1.5, %v565_v39  ;;  %v553_v53 = vmul.f32 %v814_v33, %v550_v31  ;;  %vm559_vm4 = vweird.f32 %v814_v33 }
 0x305   :  { %vm560_vm6 = vmor %vm558_vm5, %vm559_vm4 }
 0x306   :  { %v554_v15 = vmul.f32 %v814_v33, %v553_v53  ;;  %v567_v36 = vmul.f32 %v812_v32, %v566_v10 }
 0x308   :  { %v555_v38 = vmul.f32 0.5, %v554_v15  ;;  %v571_v28 = vsel %vm570_vm3, %v812_v32, %v567_v36 }
 0x309   :  { %v573_v42 = vmul.f32 %v571_v28, %v549_v35 }
 0x30a   :  { %v556_v40 = vsub.f32 1.5, %v555_v38 }
 0x30b   :  { %588 = vperm.xlu2 %802, %v573_v42   ;;  %v577_v11 = vmul.f32 %v573_v42, %v525_v17 }
 0x30c   :  { %v557_v45 = vmul.f32 %v814_v33, %v556_v40 }
 0x30d   :  { %v579_v46 = vsub.f32 %v575_v43, %v577_v11 }
 0x30e   :  { %v561_v47 = vsel %vm560_vm6, %v814_v33, %v557_v45  ;;  %vm752_vm6 = vcmp.lt.s32.totalorder %v47_v19, 384 }
 0x30f   :  { %604 = vperm.xlu0 %800, %v579_v46   ;;  %v572_v48 = vmul.f32 %v561_v47, %v548_v44 }
 0x311   :  { %583 = vperm.xlu1 %801, %v572_v48   ;;  %v576_v54 = vmul.f32 %v572_v48, %v524_v23 }
 0x313   :  { %v578_v55 = vsub.f32 %v574_v37, %v576_v54 }
 0x315   :  { %599 = vperm.xlu2 %802, %v578_v55  }
 0x317   :  { %616 = vperm.xlu0 %800, %v613_v56  }
 0x365   :  { %v589_v59 = vpop.permute.xlu2 %588 }
 0x366   :  { %v596_v60 = vmul.f32 %v589_v59, %v1123_v2  ;;  %v594_v62 = vmul.f32 %v589_v59, %v1117_v63  ;;  %v595_v0 = vmul.f32 %v589_v59, %v1119_v1  ;;  %v580_v1 = vld [vmem:[%s1182_s9] sm:$0x1]  ;;  %s854_s9 = smov [#allocation3]  }
 0x367   :  { %s760_s28 = sshll.u32 %s854_s9, 4  ;;  %s761_s28 = int_to_ptr.vmem [resolvable:$true] %s760_s28 }
 0x36f   :  { %v600_v12 = vpop.permute.xlu2 %599 }
 0x381   :  { %v605_v3 = vpop.permute.xlu0 %604 }
 0x382   :  { %v612_v58 = vadd.f32 %v605_v3, %v596_v60  ;;  %v610_v4 = vadd.f32 %v605_v3, %v594_v62  ;;  %v611_v5 = vadd.f32 %v605_v3, %v595_v0 }
 0x383   :  { %v584_v6 = vpop.permute.xlu1 %583 }
 0x384   :  { %v591_v7 = vmul.f32 %v584_v6, %v1106_v49  ;;  %v592_v29 = vmul.f32 %v584_v6, %v1108_v50  ;;  %v593_v8 = vmul.f32 %v584_v6, %v1114_v57  ;;  %638 = vmatpush.msrb.mxu1 %v610_v4  ;;  %658 = vmatpush.msrb.mxu2 %v611_v5 }
 0x385   :  { %678 = vmatpush.msra.mxu3 %v612_v58 }
 0x386   :  { %v609_v2 = vadd.f32 %v600_v12, %v593_v8  ;;  %v607_v9 = vadd.f32 %v600_v12, %v591_v7  ;;  %v608_v63 = vadd.f32 %v600_v12, %v592_v29 }
 0x388   :  { %639 = vmatpush.msrb.mxu1 %v607_v9  ;;  %659 = vmatpush.msrb.mxu2 %v608_v63 }
 0x389   :  { %679 = vmatpush.msra.mxu3 %v609_v2  ;;  %792 = vmatmul.msk.f32.vlgmr.msrb.gmra.mxu1 %vm620_vm7, %v580_v1  ;;  %v617_v49 = vpop.permute.xlu0 %616 }
 0x38a   :  { %793 = vmatmul.msk.f32.vlgmr.msrb.gmra.mxu2 %vm620_vm7, %v580_v1  ;;  %794 = vmatmul.msk.f32.vlgmr.msra.gmra.mxu3 %vm620_vm7, %v580_v1  ;;  %v619_v50 = vperm.slane %v617_v49, 0 }
 0x406   :  { %v641_v57 = vpop.f32.mrf.mxu1 }
 0x407   :  { %v642_v13 = vadd.f32 %v641_v57, %v619_v50 }
 0x409   :  { %v795_v14 = vmul.f32 -1.442695, %v642_v13 }
 0x40b   :  { %815 = vpow2.f32 %v795_v14 }
 0x40d   :  { %v661_v16 = vpop.f32.mrf.mxu2  ;;  %v681_v17 = vpop.f32.mrf.mxu3 }
 0x40e   :  { %v662_v18 = vadd.f32 %v661_v16, %v619_v50  ;;  %v682_v20 = vadd.f32 %v681_v17, %v619_v50 }
 0x410   :  { %v796_v21 = vmul.f32 -1.442695, %v662_v18  ;;  %v797_v22 = vmul.f32 -1.442695, %v682_v20 }
 0x411   :  { %v816_v23 = vpop.eup %815 }
 0x412   :  { %v693_v52 = vadd.f32 1.0, %v816_v23  ;;  %817 = vpow2.f32 %v796_v21 }
 0x413   :  { %819 = vpow2.f32 %v797_v22 }
 0x414   :  { %821 = vrcp.f32 %v693_v52  ;;  %vm701_vm8 = vweird.f32 %v693_v52  ;;  %v707_v28 = vand.u32 2147483648, %v693_v52  ;;  %v705_v11 = vand.u32 2147483647, %v693_v52 }
 0x416   :  { %v708_v54 = vor.u32 1.1754944e-38, %v707_v28  ;;  %vm706_vm5 = vcmp.eq.f32.partialorder %v705_v11, 8.507059e+37 }
 0x418   :  { %v818_v24 = vpop.eup %817 }
 0x419   :  { %v820_v61 = vpop.eup %819  ;;  %v694_v25 = vadd.f32 1.0, %v818_v24 }
 0x41a   :  { %v822_v26 = vpop.eup %821  ;;  %v695_v30 = vadd.f32 1.0, %v820_v61 }
 0x41b   :  { %v697_v41 = vmul.f32 %v822_v26, %v693_v52  ;;  %823 = vrcp.f32 %v694_v25  ;;  %v722_v10 = vand.u32 2147483648, %v694_v25  ;;  %vm702_vm9 = vweird.f32 %v822_v26 }
 0x41c   :  { %825 = vrcp.f32 %v695_v30  ;;  %v720_v15 = vand.u32 2147483647, %v694_v25  ;;  %v737_v38 = vand.u32 2147483648, %v695_v30  ;;  %v735_v40 = vand.u32 2147483647, %v695_v30  ;;  %vm1161_vm13 = vmor %vm701_vm8, %vm702_vm9 }
 0x41d   :  { %v698_v51 = vsub.f32 1.0, %v697_v41  ;;  %vm716_vm12 = vweird.f32 %v694_v25  ;;  %v723_v45 = vor.u32 1.1754944e-38, %v722_v10  ;;  %vm731_vm15 = vweird.f32 %v695_v30 }
 0x41e   :  { %vm721_vm2 = vcmp.eq.f32.partialorder %v720_v15, 8.507059e+37  ;;  %v738_v37 = vor.u32 1.1754944e-38, %v737_v38  ;;  %vm736_vm4 = vcmp.eq.f32.partialorder %v735_v40, 8.507059e+37 }
 0x41f   :  { %v699_v27 = vmul.f32 %v822_v26, %v698_v51 }
 0x421   :  { %v824_v31 = vpop.eup %823  ;;  %v700_v36 = vadd.f32 %v822_v26, %v699_v27 }
 0x422   :  { %v826_v32 = vpop.eup %825  ;;  %v712_v34 = vmul.f32 %v824_v31, %v694_v25  ;;  %vm717_vm10 = vweird.f32 %v824_v31 }
 0x423   :  { %v727_v39 = vmul.f32 %v826_v32, %v695_v30  ;;  %vm732_vm11 = vweird.f32 %v826_v32  ;;  %vm718_vm14 = vmor %vm716_vm12, %vm717_vm10  ;;  %v704_v47 = vsel %vm1161_vm13, %v822_v26, %v700_v36 }
 0x424   :  { %v713_v33 = vsub.f32 1.0, %v712_v34  ;;  %vm733_vm3 = vmor %vm731_vm15, %vm732_vm11  ;;  %v709_v62 = vsel %vm706_vm5, %v708_v54, %v704_v47 }
 0x425   :  { %v728_v53 = vsub.f32 1.0, %v727_v39 }
 0x426   :  { %v714_v35 = vmul.f32 %v824_v31, %v713_v33 }
 0x427   :  { %v729_v42 = vmul.f32 %v826_v32, %v728_v53 }
 0x428   :  { %v715_v44 = vadd.f32 %v824_v31, %v714_v35 }
 0x429   :  { %v730_v46 = vadd.f32 %v826_v32, %v729_v42 }
 0x42a   :  { %v719_v48 = vsel %vm718_vm14, %v824_v31, %v715_v44 }
 0x42b   :  { %v724_v55 = vsel %vm721_vm2, %v723_v45, %v719_v48  ;;  %v734_v56 = vsel %vm733_vm3, %v826_v32, %v730_v46 }
 0x42c   :  { %v739_v59 = vsel %vm736_vm4, %v738_v37, %v734_v56  ;;  %v744_v60 = vrot.slane %v724_v55, 7 }
 0x42d   :  { %v745_v0 = vrot.slane %v739_v59, 6 }
 0x42e   :  { %v747_v3 = vsel %vm746_vm1, %v709_v62, %v744_v60 }
 0x42f   :  { %v748_v58 = vsel %vm95_vm0, %v747_v3, %v745_v0 }
 0x430   :  { %754 = vst.msk [vmem:[#allocation3] sm:$0x7] %vm752_vm6, %v748_v58 }
 0x431   :  { %765 = dma.vmem_to_hbm [thread:$0]  %s761_s28, 48, %s763_s12, [#allocation4]  }
 0x432   :  { %851 = dma.done.wait [#allocation4], 48  }
 0x433   :  { %852 = vsyncadd [#allocation4], 4294967248 }
 0x434   :  { %770 = vsyncpa [#allocation4], 1 }

</bundles_post_ra>
